<compile_context>
chip_gen: v6e
topology: v6e:2x2x1
jax: 0.10.0
libtpu: 0.0.40
codegen_flags: <defaults>
</compile_context>

<pallas_src>
import math
from collections import OrderedDict

import jax
import jax.numpy as jnp
from jax.experimental import pallas as pl
from jax.experimental.pallas import tpu as pltpu


def lr_kernel(emb_ref, w_ref, b_ref, out_ref):
    # emb_ref: [F, TB] f32 gathered embeddings (feature on sublanes, batch on lanes)
    # w_ref:   [F, 1]  f32 linear weight column (resident across the grid)
    # b_ref:   [1, 1]  f32 combined bias (linear bias + extra bias), in SMEM
    # out_ref: [1, TB] f32 lane-dense output (batch on lanes)
    weighted = emb_ref[...] * w_ref[...]                                # [F, TB] (VPU)
    logits = jnp.sum(weighted, axis=0, keepdims=True) + b_ref[0, 0]     # [1, TB] (XLU sublane reduce)
    out_ref[...] = jax.nn.sigmoid(logits)                               # EUP exp


def logistic_regression_forward(x_idx, emb_flat, offsets, w, b_total):
    """x_idx: [B, F] int32 per-feature indices; emb_flat: [V_total] f32;
    offsets: [F] int32 cumulative vocab offsets; w: [F] f32; b_total: scalar f32."""
    B, F = x_idx.shape
    V = emb_flat.shape[0]

    # Glue: global flat indices into the concatenated embedding table.
    # Clamp so out-of-range indices can't read arbitrary memory (PyTorch would raise).
    flat_idx = jnp.clip((x_idx + offsets[None, :]).astype(jnp.int32), 0, V - 1)  # [B, F]

    # O(B*F) gather done by XLA; kernel never sees anything Vp-sized.
    embed_map = emb_flat[flat_idx]                                      # [B, F] f32

    # Lane-dense layout: feature on sublanes, batch on lanes; pad batch to the tile.
    TB = min(512, max(128, ((B + 127) // 128) * 128))   # batch tile (lane multiple)
    Bp = pl.cdiv(B, TB) * TB
    emb_fb = jnp.pad(embed_map.T, ((0, 0), (0, Bp - B)))                # [F, Bp]

    w_col = w.reshape(F, 1).astype(jnp.float32)                         # [F, 1]
    b_arr = jnp.reshape(b_total, (1, 1)).astype(jnp.float32)            # [1, 1]

    out = pl.pallas_call(
        lr_kernel,
        out_shape=jax.ShapeDtypeStruct((1, Bp), jnp.float32),
        grid=(Bp // TB,),
        in_specs=[
            pl.BlockSpec((F, TB), lambda i: (0, i)),                    # embeddings, batch-tiled
            pl.BlockSpec((F, 1), lambda i: (0, 0)),                     # weight, resident
            pl.BlockSpec(memory_space=pltpu.MemorySpace.SMEM),          # bias scalar
        ],
        out_specs=pl.BlockSpec((1, TB), lambda i: (0, i)),              # lane-dense output
        compiler_params=pltpu.CompilerParams(
            dimension_semantics=("parallel",)),                         # megacore on v7x
    )(emb_fb, w_col, b_arr)

    return out[0, :B].reshape(B, 1)


if __name__ == "__main__":
    # Synthetic config: 4 sparse features with small vocabularies.
    feas_nunique = OrderedDict([("f0", 10), ("f1", 20), ("f2", 15), ("f3", 8)])
    voc_sizes = list(feas_nunique.values())
    F = len(voc_sizes)
    B = 8

    key = jax.random.PRNGKey(0)
    keys = jax.random.split(key, F + 3)

    # Deterministic parameter init (xavier-uniform for embeddings, small uniform for linear).
    emb_tables = []
    for i, voc in enumerate(voc_sizes):
        bound = math.sqrt(6.0 / (voc + 1))  # xavier_uniform for [voc, 1]
        emb_tables.append(
            jax.random.uniform(keys[i], (voc,), jnp.float32, -bound, bound))
    emb_flat = jnp.concatenate(emb_tables, axis=0)                      # [V_total]
    offsets = jnp.asarray(
        [sum(voc_sizes[:i]) for i in range(F)], dtype=jnp.int32)        # [F]

    lin_bound = 1.0 / math.sqrt(F)
    w = jax.random.uniform(keys[F], (F,), jnp.float32, -lin_bound, lin_bound)
    b_lin = jax.random.uniform(keys[F + 1], (), jnp.float32, -lin_bound, lin_bound)
    b_extra = jnp.zeros((), jnp.float32)   # self.bias initialized to zeros
    b_total = b_lin + b_extra

    # Input: [B, F] integer indices, each column bounded by its vocab size.
    cols = [
        jax.random.randint(jax.random.fold_in(keys[F + 2], i), (B, 1), 0, voc)
        for i, voc in enumerate(voc_sizes)
    ]
    x = jnp.concatenate(cols, axis=1).astype(jnp.int32)                 # [B, F]

    out = logistic_regression_forward(x, emb_flat, offsets, w, b_total)
    out = jax.block_until_ready(out)

    # Pure-JAX reference of the PyTorch forward.
    embed_map_ref = emb_flat[(x + offsets[None, :])]                    # [B, F]
    ref = jax.nn.sigmoid(embed_map_ref @ w.reshape(F, 1) + b_total)
    assert out.shape == (B, 1)
    assert jnp.allclose(out, ref, atol=1e-6), (out, ref)

    print("KERNEL_OK")
</pallas_src>

<mosaic_0001>
module attributes {stable_mosaic.version = 11 : i64} {
  func.func @lr_kernel(%arg0: i32, %arg1: memref<4x128xf32, #tpu.memory_space<vmem>>, %arg2: memref<4x1xf32, #tpu.memory_space<vmem>>, %arg3: memref<1x1xf32, #tpu.memory_space<smem>>, %arg4: memref<1x128xf32, #tpu.memory_space<vmem>>) attributes {dimension_semantics = [#tpu.dimension_semantics<parallel>], iteration_bounds = array<i64: 1>, scalar_prefetch = 0 : i64, scratch_operands = 0 : i64, tpu.core_type = #tpu.core_type<tc>, window_params = [{transform_indices = @transform_0, window_bounds = array<i64: 4, 128>}, {pipeline_mode = #tpu.pipeline_mode<synchronous>, transform_indices = @transform_1, window_bounds = array<i64: 4, 1>}, {transform_indices = @transform_2, window_bounds = array<i64: 1, 1>}, {transform_indices = @transform_3, window_bounds = array<i64: 1, 128>}]} {
    %c0 = arith.constant 0 : index
    %c0_0 = arith.constant 0 : index
    %0 = vector.load %arg1[%c0, %c0_0] : memref<4x128xf32, #tpu.memory_space<vmem>>, vector<4x128xf32>
    %c0_1 = arith.constant 0 : index
    %c0_2 = arith.constant 0 : index
    %1 = vector.load %arg2[%c0_1, %c0_2] : memref<4x1xf32, #tpu.memory_space<vmem>>, vector<4x1xf32>
    %2 = vector.broadcast %1 : vector<4x1xf32> to vector<4x128xf32>
    %3 = arith.mulf %0, %2 : vector<4x128xf32>
    %cst = arith.constant dense<0.000000e+00> : vector<128xf32>
    %4 = vector.multi_reduction <add>, %3, %cst [0] : vector<4x128xf32> to vector<128xf32>
    %5 = vector.shape_cast %4 : vector<128xf32> to vector<1x128xf32>
    %c0_3 = arith.constant 0 : index
    %c0_4 = arith.constant 0 : index
    %6 = memref.load %arg3[%c0_3, %c0_4] : memref<1x1xf32, #tpu.memory_space<smem>>
    %7 = vector.broadcast %6 : f32 to vector<1x128xf32>
    %8 = arith.addf %5, %7 : vector<1x128xf32>
    %9 = arith.negf %8 : vector<1x128xf32>
    %10 = math.exp %9 : vector<1x128xf32>
    %cst_5 = arith.constant 1.000000e+00 : f32
    %11 = vector.broadcast %cst_5 : f32 to vector<1x128xf32>
    %12 = arith.addf %11, %10 : vector<1x128xf32>
    %13 = arith.divf %11, %12 : vector<1x128xf32>
    %c0_6 = arith.constant 0 : index
    %c0_7 = arith.constant 0 : index
    %14 = vector.load %arg4[%c0_6, %c0_7] : memref<1x128xf32, #tpu.memory_space<vmem>>, vector<1x128xf32>
    tpu.vector_store %arg4[%c0_6, %c0_7], %13 {strides = array<i32>} : memref<1x128xf32, #tpu.memory_space<vmem>>, vector<1x128xf32>,
    return
  }
  func.func @transform_0(%arg0: i32) -> (i32, i32) {
    %c0_i32 = arith.constant 0 : i32
    %c0_i32_0 = arith.constant 0 : i32
    return %c0_i32, %arg0 : i32, i32
  }
  func.func @transform_1(%arg0: i32) -> (i32, i32) {
    %c0_i32 = arith.constant 0 : i32
    %c0_i32_0 = arith.constant 0 : i32
    %c0_i32_1 = arith.constant 0 : i32
    return %c0_i32, %c0_i32_0 : i32, i32
  }
  func.func @transform_2(%arg0: i32) -> (i32, i32) {
    %c0_i32 = arith.constant 0 : i32
    %c0_i32_0 = arith.constant 0 : i32
    %c0_i32_1 = arith.constant 0 : i32
    return %c0_i32, %c0_i32_0 : i32, i32
  }
  func.func @transform_3(%arg0: i32) -> (i32, i32) {
    %c0_i32 = arith.constant 0 : i32
    %c0_i32_0 = arith.constant 0 : i32
    return %c0_i32, %arg0 : i32, i32
  }
}

</mosaic_0001>

<bundles_post_ra>
// kernel: tpu_custom_call.1
= control target key start
LH: loop header
LB: loop body
LE: loop exit
PB: predicated region body
PF: predicated region fallthrough
CT: control target
= control target key end

     0   :  { %v86_v1 = vmov 0   ;;  %s120_s0 = inlined_call_operand.vmem [shape: f32[4,128], index: 0, kind: input, shape index: {}]   ;;  %s121_s1 = inlined_call_operand.vmem [shape: f32[4,1], index: 1, kind: input, shape index: {}]   ;;  %s122_s2 = inlined_call_operand.<no memory space> [shape: f32[1,1], index: 2, kind: input, shape index: {}]   ;;  %s123_s3 = inlined_call_operand.hbm [shape: f32[1,128], index: 3, kind: output, shape index: {}]  }
   0x1   :  { %v17_v0 = vld [vmem:[%s121_s1] sm:$0xf]  ;;  %59 = vset.pattern.permute.xlu0 %v86_v1 }
   0x2   :  { %9 = vsyncpa [#allocation4], 0  ;;  %20 = vperm.xlu0 %59, %v17_v0   ;;  %v16_v2 = vld [vmem:[%s120_s0] sm:$0xf]  ;;  %vm24_vm0 = vcmask 1043456   ;;  %v33_v11 = vstv %s122_s2  ;;  %s87_s0 = smov [#allocation3]  }
   0x3   :  { %s48_s1 = sshll.u32 %s87_s0, 4  ;;  %s49_s1 = int_to_ptr.vmem [resolvable:$true] %s48_s1 }
   0x4   :  { %s64_s18 = scalar_lea.vmem %s49_s1, 16  ;;  %s68_s19 = scalar_lea.vmem %s49_s1, 32 }
   0x5   :  { %p65_p0 = scmp.ne.s32.totalorder %s49_s1, %s64_s18  ;;  %p69_p1 = scmp.lt.s32.totalorder %s49_s1, %s49_s1 }
   0x6   :  { %p70_p2 = scmp.lt.s32.totalorder %s68_s19, %s64_s18 }
   0x8   :  { %p71_p3 = por %p70_p2, %p69_p1 }
   0xa   :  { %p72_p4 = pnand %p71_p3, %p65_p0 }
  0x7d   :  { %v21_v3 = vpop.permute.xlu0 %20 }
  0x7e   :  { %v23_v4 = vmul.f32 %v21_v3, %v16_v2 }
  0x80   :  { %v25_v5 = vsel %vm24_vm0, %v23_v4, 0.0 }
  0x81   :  { %v26_v6 = vrot.slane %v25_v5, 4 }
  0x83   :  { %v27_v7 = vadd.f32 %v26_v6, %v25_v5 }
  0x85   :  { %v28_v8 = vrot.slane %v27_v7, 2 }
  0x87   :  { %v29_v9 = vadd.f32 %v28_v8, %v27_v7 }
  0x89   :  { %v30_v10 = vrot.slane %v29_v9, 1 }
  0x8b   :  { %v31_v12 = vadd.f32 %v30_v10, %v29_v9 }
  0x8d   :  { %v34_v13 = vadd.f32 %v33_v11, %v31_v12 }
  0x8f   :  { %v56_v14 = vmul.f32 -1.442695, %v34_v13 }
  0x91   :  { %60 = vpow2.f32 %v56_v14 }
  0x9e   :  { %v61_v15 = vpop.eup %60 }
  0x9f   :  { %v38_v16 = vadd.f32 1.0, %v61_v15 }
  0xa1   :  { %62 = vrcp.f32 %v38_v16 }
  0xae   :  { %v63_v17 = vpop.eup %62 }
  0xaf   :  { %41 = vst [vmem:[#allocation3] sm:$0x1] %v63_v17 }
  0xb0   :  { %75 = shalt.err (!%p72_p4)
}
  0xb1   :  { %51 = dma.vmem_to_hbm [thread:$0]  %s49_s1, 16, %s123_s3, [#allocation4]  }
  0xb2   :  { %84 = dma.done.wait [#allocation4], 16  }
  0xb3   :  { %85 = vsyncadd [#allocation4], 4294967280 }
  0xb4   :  { %55 = vsyncpa [#allocation4], 1 }

</bundles_post_ra>
